<compile_context>
chip_gen: v6e
topology: v6e:2x2x1
jax: 0.10.0
libtpu: 0.0.40
codegen_flags: <defaults>
</compile_context>

<pallas_src>
import functools

import jax
import jax.numpy as jnp
from jax.experimental import pallas as pl
from jax.experimental.pallas import tpu as pltpu

_LANE = 128
_BATCH_ALIGN = 16  # covers f32 (8) and bf16 (16) sublane tiling


def _round_up(x, m):
    return (x + m - 1) // m * m


def _mlp_kernel(x_ref, w1_ref, b1_ref, w2_ref, b2_ref, w3_ref, b3_ref, o_ref,
                *, compute_dtype):
    cd = compute_dtype
    x = x_ref[...].astype(cd)
    # layer1: Linear + ReLU (f32 accumulation on the MXU)
    h1 = jnp.dot(x, w1_ref[...].astype(cd), preferred_element_type=jnp.float32)
    h1 = jnp.maximum(h1 + b1_ref[...], 0.0)
    # layer2: Linear + ReLU
    h2 = jnp.dot(h1.astype(cd), w2_ref[...].astype(cd),
                 preferred_element_type=jnp.float32)
    h2 = jnp.maximum(h2 + b2_ref[...], 0.0)
    # layer3: Linear (no activation)
    y = jnp.dot(h2.astype(cd), w3_ref[...].astype(cd),
                preferred_element_type=jnp.float32)
    o_ref[...] = (y + b3_ref[...]).astype(o_ref.dtype)


def mlp_forward(x, params, *, block_b=512, compute_dtype=jnp.float32):
    """Run the fused 3-layer MLP. x: (B, input_size) -> (B, output_size)."""
    w1, b1, w2, b2, w3, b3 = params
    B, d_in = x.shape
    hidden = w1.shape[1]
    d_out = w3.shape[1]
    out_dtype = x.dtype

    # Lane-dense output: pad the (possibly 1-wide) output feature dim to a full 128-lane slab.
    d_out_p = _round_up(d_out, _LANE)
    if d_out_p != d_out:
        w3 = jnp.pad(w3, ((0, 0), (0, d_out_p - d_out)))
        b3 = jnp.pad(b3, ((0, 0), (0, d_out_p - d_out)))

    # Batch tile: multiple of the sublane tile, clamped to the (padded) batch size.
    block_b = max(_BATCH_ALIGN, min(_round_up(block_b, _BATCH_ALIGN),
                                    _round_up(B, _BATCH_ALIGN)))
    B_p = _round_up(B, block_b)
    if B_p != B:
        x = jnp.pad(x, ((0, B_p - B), (0, 0)))

    # Biases broadcast in f32 (accumulator dtype).
    b1f, b2f, b3f = (b.astype(jnp.float32) for b in (b1, b2, b3))

    grid = (B_p // block_b,)
    kernel = functools.partial(_mlp_kernel, compute_dtype=compute_dtype)

    # VMEM working set: x tile (double-buffered), weights + biases (grid-invariant),
    # output tile (double-buffered), f32 intermediates. Budget 2x weights in case the
    # single-buffer hint is rejected and we fall back to the default double buffering.
    xbytes = jnp.dtype(x.dtype).itemsize
    obytes = jnp.dtype(out_dtype).itemsize
    wbytes = jnp.dtype(w1.dtype).itemsize
    working = (2 * block_b * d_in * xbytes
               + 2 * (d_in * hidden + hidden * hidden + hidden * d_out_p) * wbytes
               + 2 * (2 * hidden + d_out_p) * 4
               + 2 * block_b * d_out_p * obytes
               + 3 * block_b * hidden * 4
               + block_b * d_out_p * 4)
    vmem_limit = int(min(max(working + (8 << 20), 32 << 20), 64 << 20))

    def _run(single_buffer_weights):
        if single_buffer_weights:
            def wspec(shape):
                return pl.BlockSpec(shape, lambda i: (0, 0),
                                    pipeline_mode=pl.Buffered(1))
        else:
            def wspec(shape):
                return pl.BlockSpec(shape, lambda i: (0, 0))

        return pl.pallas_call(
            kernel,
            out_shape=jax.ShapeDtypeStruct((B_p, d_out_p), out_dtype),
            grid_spec=pltpu.PrefetchScalarGridSpec(
                num_scalar_prefetch=0,
                grid=grid,
                in_specs=[
                    pl.BlockSpec((block_b, d_in), lambda i: (i, 0)),  # x tile (pipelined)
                    wspec((d_in, hidden)),      # w1 (grid-invariant)
                    wspec((1, hidden)),         # b1
                    wspec((hidden, hidden)),    # w2
                    wspec((1, hidden)),         # b2
                    wspec((hidden, d_out_p)),   # w3 (padded to 128 lanes)
                    wspec((1, d_out_p)),        # b3
                ],
                out_specs=pl.BlockSpec((block_b, d_out_p), lambda i: (i, 0)),
            ),
            compiler_params=pltpu.CompilerParams(
                dimension_semantics=("parallel",),
                vmem_limit_bytes=vmem_limit,
            ),
        )(x, w1, b1f, w2, b2f, w3, b3f)

    try:
        out = _run(True)
    except Exception:
        # Fallback if this JAX version rejects single-buffering via Buffered(1).
        out = _run(False)

    return out[:B, :d_out]


def init_params(key, input_size, hidden_size, output_size=1):
    """Deterministic init mimicking nn.Linear's U(-1/sqrt(fan_in), 1/sqrt(fan_in))."""
    ks = jax.random.split(key, 6)

    def lin(kw, kb, fan_in, fan_out):
        bound = 1.0 / jnp.sqrt(fan_in)
        w = jax.random.uniform(kw, (fan_in, fan_out), jnp.float32, -bound, bound)
        b = jax.random.uniform(kb, (1, fan_out), jnp.float32, -bound, bound)
        return w, b

    w1, b1 = lin(ks[0], ks[1], input_size, hidden_size)
    w2, b2 = lin(ks[2], ks[3], hidden_size, hidden_size)
    w3, b3 = lin(ks[4], ks[5], hidden_size, output_size)
    return (w1, b1, w2, b2, w3, b3)


def mlp_ref(x, params):
    w1, b1, w2, b2, w3, b3 = params
    h1 = jnp.maximum(x @ w1 + b1, 0.0)
    h2 = jnp.maximum(h1 @ w2 + b2, 0.0)
    return h2 @ w3 + b3


if __name__ == "__main__":
    key = jax.random.PRNGKey(0)
    k_x, k_p = jax.random.split(key)

    batch, input_size, hidden_size, output_size = 8, 16, 32, 1
    x = jax.random.normal(k_x, (batch, input_size), jnp.float32)
    params = init_params(k_p, input_size, hidden_size, output_size)

    out = mlp_forward(x, params)
    out = jax.block_until_ready(out)

    ref = mlp_ref(x, params)
    assert out.shape == (batch, output_size), out.shape
    # f32 matmuls with f32 accumulation -> tight agreement with the reference.
    assert jnp.allclose(out, ref, atol=1e-4, rtol=1e-4), (
        f"max abs diff {jnp.max(jnp.abs(out - ref))}"
    )
    print("KERNEL_OK")
</pallas_src>

<mosaic_0001>
module attributes {stable_mosaic.version = 11 : i64} {
  func.func @_mlp_kernel(%arg0: i32, %arg1: memref<16x16xf32, #tpu.memory_space<vmem>>, %arg2: memref<16x32xf32, #tpu.memory_space<vmem>>, %arg3: memref<1x32xf32, #tpu.memory_space<vmem>>, %arg4: memref<32x32xf32, #tpu.memory_space<vmem>>, %arg5: memref<1x32xf32, #tpu.memory_space<vmem>>, %arg6: memref<32x128xf32, #tpu.memory_space<vmem>>, %arg7: memref<1x128xf32, #tpu.memory_space<vmem>>, %arg8: memref<16x128xf32, #tpu.memory_space<vmem>>) attributes {dimension_semantics = [#tpu.dimension_semantics<parallel>], iteration_bounds = array<i64: 1>, scalar_prefetch = 0 : i64, scratch_operands = 0 : i64, tpu.core_type = #tpu.core_type<tc>, window_params = [{transform_indices = @transform_0, window_bounds = array<i64: 16, 16>}, {pipeline_mode = #tpu.pipeline_mode<synchronous>, transform_indices = @transform_1, window_bounds = array<i64: 16, 32>}, {pipeline_mode = #tpu.pipeline_mode<synchronous>, transform_indices = @transform_2, window_bounds = array<i64: 1, 32>}, {pipeline_mode = #tpu.pipeline_mode<synchronous>, transform_indices = @transform_3, window_bounds = array<i64: 32, 32>}, {pipeline_mode = #tpu.pipeline_mode<synchronous>, transform_indices = @transform_4, window_bounds = array<i64: 1, 32>}, {pipeline_mode = #tpu.pipeline_mode<synchronous>, transform_indices = @transform_5, window_bounds = array<i64: 32, 128>}, {pipeline_mode = #tpu.pipeline_mode<synchronous>, transform_indices = @transform_6, window_bounds = array<i64: 1, 128>}, {transform_indices = @transform_7, window_bounds = array<i64: 16, 128>}]} {
    %c0 = arith.constant 0 : index
    %c0_0 = arith.constant 0 : index
    %0 = vector.load %arg1[%c0, %c0_0] : memref<16x16xf32, #tpu.memory_space<vmem>>, vector<16x16xf32>
    %c0_1 = arith.constant 0 : index
    %c0_2 = arith.constant 0 : index
    %1 = vector.load %arg2[%c0_1, %c0_2] : memref<16x32xf32, #tpu.memory_space<vmem>>, vector<16x32xf32>
    %cst = arith.constant dense<0.000000e+00> : vector<16x32xf32>
    %2 = tpu.matmul %0, %1, %cst {dimension_numbers = #tpu.dot_dimension_numbers<[1], [0], [0], [1], [0, 0, 1, 1], [], []>} : vector<16x16xf32>, vector<16x32xf32>, vector<16x32xf32> -> vector<16x32xf32>
    %c0_3 = arith.constant 0 : index
    %c0_4 = arith.constant 0 : index
    %3 = vector.load %arg3[%c0_3, %c0_4] : memref<1x32xf32, #tpu.memory_space<vmem>>, vector<1x32xf32>
    %4 = vector.broadcast %3 : vector<1x32xf32> to vector<16x32xf32>
    %5 = arith.addf %2, %4 : vector<16x32xf32>
    %cst_5 = arith.constant 0.000000e+00 : f32
    %6 = vector.broadcast %cst_5 : f32 to vector<16x32xf32>
    %7 = arith.maximumf %5, %6 : vector<16x32xf32>
    %c0_6 = arith.constant 0 : index
    %c0_7 = arith.constant 0 : index
    %8 = vector.load %arg4[%c0_6, %c0_7] : memref<32x32xf32, #tpu.memory_space<vmem>>, vector<32x32xf32>
    %cst_8 = arith.constant dense<0.000000e+00> : vector<16x32xf32>
    %9 = tpu.matmul %7, %8, %cst_8 {dimension_numbers = #tpu.dot_dimension_numbers<[1], [0], [0], [1], [0, 0, 1, 1], [], []>} : vector<16x32xf32>, vector<32x32xf32>, vector<16x32xf32> -> vector<16x32xf32>
    %c0_9 = arith.constant 0 : index
    %c0_10 = arith.constant 0 : index
    %10 = vector.load %arg5[%c0_9, %c0_10] : memref<1x32xf32, #tpu.memory_space<vmem>>, vector<1x32xf32>
    %11 = vector.broadcast %10 : vector<1x32xf32> to vector<16x32xf32>
    %12 = arith.addf %9, %11 : vector<16x32xf32>
    %cst_11 = arith.constant 0.000000e+00 : f32
    %13 = vector.broadcast %cst_11 : f32 to vector<16x32xf32>
    %14 = arith.maximumf %12, %13 : vector<16x32xf32>
    %c0_12 = arith.constant 0 : index
    %c0_13 = arith.constant 0 : index
    %15 = vector.load %arg6[%c0_12, %c0_13] : memref<32x128xf32, #tpu.memory_space<vmem>>, vector<32x128xf32>
    %cst_14 = arith.constant dense<0.000000e+00> : vector<16x128xf32>
    %16 = tpu.matmul %14, %15, %cst_14 {dimension_numbers = #tpu.dot_dimension_numbers<[1], [0], [0], [1], [0, 0, 1, 1], [], []>} : vector<16x32xf32>, vector<32x128xf32>, vector<16x128xf32> -> vector<16x128xf32>
    %c0_15 = arith.constant 0 : index
    %c0_16 = arith.constant 0 : index
    %17 = vector.load %arg7[%c0_15, %c0_16] : memref<1x128xf32, #tpu.memory_space<vmem>>, vector<1x128xf32>
    %18 = vector.broadcast %17 : vector<1x128xf32> to vector<16x128xf32>
    %19 = arith.addf %16, %18 : vector<16x128xf32>
    %c0_17 = arith.constant 0 : index
    %c0_18 = arith.constant 0 : index
    %20 = vector.load %arg8[%c0_17, %c0_18] : memref<16x128xf32, #tpu.memory_space<vmem>>, vector<16x128xf32>
    tpu.vector_store %arg8[%c0_17, %c0_18], %19 {strides = array<i32>} : memref<16x128xf32, #tpu.memory_space<vmem>>, vector<16x128xf32>,
    return
  }
  func.func @transform_0(%arg0: i32) -> (i32, i32) {
    %c0_i32 = arith.constant 0 : i32
    %c0_i32_0 = arith.constant 0 : i32
    return %arg0, %c0_i32 : i32, i32
  }
  func.func @transform_1(%arg0: i32) -> (i32, i32) {
    %c0_i32 = arith.constant 0 : i32
    %c0_i32_0 = arith.constant 0 : i32
    %c0_i32_1 = arith.constant 0 : i32
    return %c0_i32, %c0_i32_0 : i32, i32
  }
  func.func @transform_2(%arg0: i32) -> (i32, i32) {
    %c0_i32 = arith.constant 0 : i32
    %c0_i32_0 = arith.constant 0 : i32
    %c0_i32_1 = arith.constant 0 : i32
    return %c0_i32, %c0_i32_0 : i32, i32
  }
  func.func @transform_3(%arg0: i32) -> (i32, i32) {
    %c0_i32 = arith.constant 0 : i32
    %c0_i32_0 = arith.constant 0 : i32
    %c0_i32_1 = arith.constant 0 : i32
    return %c0_i32, %c0_i32_0 : i32, i32
  }
  func.func @transform_4(%arg0: i32) -> (i32, i32) {
    %c0_i32 = arith.constant 0 : i32
    %c0_i32_0 = arith.constant 0 : i32
    %c0_i32_1 = arith.constant 0 : i32
    return %c0_i32, %c0_i32_0 : i32, i32
  }
  func.func @transform_5(%arg0: i32) -> (i32, i32) {
    %c0_i32 = arith.constant 0 : i32
    %c0_i32_0 = arith.constant 0 : i32
    %c0_i32_1 = arith.constant 0 : i32
    return %c0_i32, %c0_i32_0 : i32, i32
  }
  func.func @transform_6(%arg0: i32) -> (i32, i32) {
    %c0_i32 = arith.constant 0 : i32
    %c0_i32_0 = arith.constant 0 : i32
    %c0_i32_1 = arith.constant 0 : i32
    return %c0_i32, %c0_i32_0 : i32, i32
  }
  func.func @transform_7(%arg0: i32) -> (i32, i32) {
    %c0_i32 = arith.constant 0 : i32
    %c0_i32_0 = arith.constant 0 : i32
    return %arg0, %c0_i32 : i32, i32
  }
}

module attributes {stable_mosaic.version = 11 : i64} {
  func.func @_mlp_kernel(%arg0: i32, %arg1: memref<16x16xf32, #tpu.memory_space<vmem>>, %arg2: memref<16x32xf32, #tpu.memory_space<vmem>>, %arg3: memref<1x32xf32, #tpu.memory_space<vmem>>, %arg4: memref<32x32xf32, #tpu.memory_space<vmem>>, %arg5: memref<1x32xf32, #tpu.memory_space<vmem>>, %arg6: memref<32x128xf32, #tpu.memory_space<vmem>>, %arg7: memref<1x128xf32, #tpu.memory_space<vmem>>, %arg8: memref<16x128xf32, #tpu.memory_space<vmem>>) attributes {dimension_semantics = [#tpu.dimension_semantics<parallel>], iteration_bounds = array<i64: 1>, scalar_prefetch = 0 : i64, scratch_operands = 0 : i64, tpu.core_type = #tpu.core_type<tc>, window_params = [{transform_indices = @transform_0, window_bounds = array<i64: 16, 16>}, {pipeline_mode = #tpu.pipeline_mode<synchronous>, transform_indices = @transform_1, window_bounds = array<i64: 16, 32>}, {pipeline_mode = #tpu.pipeline_mode<synchronous>, transform_indices = @transform_2, window_bounds = array<i64: 1, 32>}, {pipeline_mode = #tpu.pipeline_mode<synchronous>, transform_indices = @transform_3, window_bounds = array<i64: 32, 32>}, {pipeline_mode = #tpu.pipeline_mode<synchronous>, transform_indices = @transform_4, window_bounds = array<i64: 1, 32>}, {pipeline_mode = #tpu.pipeline_mode<synchronous>, transform_indices = @transform_5, window_bounds = array<i64: 32, 128>}, {pipeline_mode = #tpu.pipeline_mode<synchronous>, transform_indices = @transform_6, window_bounds = array<i64: 1, 128>}, {transform_indices = @transform_7, window_bounds = array<i64: 16, 128>}]} {
    %c0 = arith.constant 0 : index
    %c0_0 = arith.constant 0 : index
    %0 = vector.load %arg1[%c0, %c0_0] : memref<16x16xf32, #tpu.memory_space<vmem>>, vector<16x16xf32>
    %c0_1 = arith.constant 0 : index
    %c0_2 = arith.constant 0 : index
    %1 = vector.load %arg2[%c0_1, %c0_2] : memref<16x32xf32, #tpu.memory_space<vmem>>, vector<16x32xf32>
    %cst = arith.constant dense<0.000000e+00> : vector<16x32xf32>
    %2 = tpu.matmul %0, %1, %cst {dimension_numbers = #tpu.dot_dimension_numbers<[1], [0], [0], [1], [0, 0, 1, 1], [], []>} : vector<16x16xf32>, vector<16x32xf32>, vector<16x32xf32> -> vector<16x32xf32>
    %c0_3 = arith.constant 0 : index
    %c0_4 = arith.constant 0 : index
    %3 = vector.load %arg3[%c0_3, %c0_4] : memref<1x32xf32, #tpu.memory_space<vmem>>, vector<1x32xf32>
    %4 = vector.broadcast %3 : vector<1x32xf32> to vector<16x32xf32>
    %5 = arith.addf %2, %4 : vector<16x32xf32>
    %cst_5 = arith.constant 0.000000e+00 : f32
    %6 = vector.broadcast %cst_5 : f32 to vector<16x32xf32>
    %7 = arith.maximumf %5, %6 : vector<16x32xf32>
    %c0_6 = arith.constant 0 : index
    %c0_7 = arith.constant 0 : index
    %8 = vector.load %arg4[%c0_6, %c0_7] : memref<32x32xf32, #tpu.memory_space<vmem>>, vector<32x32xf32>
    %cst_8 = arith.constant dense<0.000000e+00> : vector<16x32xf32>
    %9 = tpu.matmul %7, %8, %cst_8 {dimension_numbers = #tpu.dot_dimension_numbers<[1], [0], [0], [1], [0, 0, 1, 1], [], []>} : vector<16x32xf32>, vector<32x32xf32>, vector<16x32xf32> -> vector<16x32xf32>
    %c0_9 = arith.constant 0 : index
    %c0_10 = arith.constant 0 : index
    %10 = vector.load %arg5[%c0_9, %c0_10] : memref<1x32xf32, #tpu.memory_space<vmem>>, vector<1x32xf32>
    %11 = vector.broadcast %10 : vector<1x32xf32> to vector<16x32xf32>
    %12 = arith.addf %9, %11 : vector<16x32xf32>
    %cst_11 = arith.constant 0.000000e+00 : f32
    %13 = vector.broadcast %cst_11 : f32 to vector<16x32xf32>
    %14 = arith.maximumf %12, %13 : vector<16x32xf32>
    %c0_12 = arith.constant 0 : index
    %c0_13 = arith.constant 0 : index
    %15 = vector.load %arg6[%c0_12, %c0_13] : memref<32x128xf32, #tpu.memory_space<vmem>>, vector<32x128xf32>
    %cst_14 = arith.constant dense<0.000000e+00> : vector<16x128xf32>
    %16 = tpu.matmul %14, %15, %cst_14 {dimension_numbers = #tpu.dot_dimension_numbers<[1], [0], [0], [1], [0, 0, 1, 1], [], []>} : vector<16x32xf32>, vector<32x128xf32>, vector<16x128xf32> -> vector<16x128xf32>
    %c0_15 = arith.constant 0 : index
    %c0_16 = arith.constant 0 : index
    %17 = vector.load %arg7[%c0_15, %c0_16] : memref<1x128xf32, #tpu.memory_space<vmem>>, vector<1x128xf32>
    %18 = vector.broadcast %17 : vector<1x128xf32> to vector<16x128xf32>
    %19 = arith.addf %16, %18 : vector<16x128xf32>
    %c0_17 = arith.constant 0 : index
    %c0_18 = arith.constant 0 : index
    %20 = vector.load %arg8[%c0_17, %c0_18] : memref<16x128xf32, #tpu.memory_space<vmem>>, vector<16x128xf32>
    tpu.vector_store %arg8[%c0_17, %c0_18], %19 {strides = array<i32>} : memref<16x128xf32, #tpu.memory_space<vmem>>, vector<16x128xf32>,
    return
  }
  func.func @transform_0(%arg0: i32) -> (i32, i32) {
    %c0_i32 = arith.constant 0 : i32
    %c0_i32_0 = arith.constant 0 : i32
    return %arg0, %c0_i32 : i32, i32
  }
  func.func @transform_1(%arg0: i32) -> (i32, i32) {
    %c0_i32 = arith.constant 0 : i32
    %c0_i32_0 = arith.constant 0 : i32
    %c0_i32_1 = arith.constant 0 : i32
    return %c0_i32, %c0_i32_0 : i32, i32
  }
  func.func @transform_2(%arg0: i32) -> (i32, i32) {
    %c0_i32 = arith.constant 0 : i32
    %c0_i32_0 = arith.constant 0 : i32
    %c0_i32_1 = arith.constant 0 : i32
    return %c0_i32, %c0_i32_0 : i32, i32
  }
  func.func @transform_3(%arg0: i32) -> (i32, i32) {
    %c0_i32 = arith.constant 0 : i32
    %c0_i32_0 = arith.constant 0 : i32
    %c0_i32_1 = arith.constant 0 : i32
    return %c0_i32, %c0_i32_0 : i32, i32
  }
  func.func @transform_4(%arg0: i32) -> (i32, i32) {
    %c0_i32 = arith.constant 0 : i32
    %c0_i32_0 = arith.constant 0 : i32
    %c0_i32_1 = arith.constant 0 : i32
    return %c0_i32, %c0_i32_0 : i32, i32
  }
  func.func @transform_5(%arg0: i32) -> (i32, i32) {
    %c0_i32 = arith.constant 0 : i32
    %c0_i32_0 = arith.constant 0 : i32
    %c0_i32_1 = arith.constant 0 : i32
    return %c0_i32, %c0_i32_0 : i32, i32
  }
  func.func @transform_6(%arg0: i32) -> (i32, i32) {
    %c0_i32 = arith.constant 0 : i32
    %c0_i32_0 = arith.constant 0 : i32
    %c0_i32_1 = arith.constant 0 : i32
    return %c0_i32, %c0_i32_0 : i32, i32
  }
  func.func @transform_7(%arg0: i32) -> (i32, i32) {
    %c0_i32 = arith.constant 0 : i32
    %c0_i32_0 = arith.constant 0 : i32
    return %arg0, %c0_i32 : i32, i32
  }
}

</mosaic_0001>

<bundles_post_ra>
// kernel: tpu_custom_call.1
= control target key start
LH: loop header
LB: loop body
LE: loop exit
PB: predicated region body
PF: predicated region fallthrough
CT: control target
= control target key end

     0   :  { %12 = vsyncpa [#allocation3], 0  ;;  %s644_s0 = inlined_call_operand.hbm [shape: f32[16,16], index: 0, kind: input, shape index: {}]   ;;  %s645_s1 = inlined_call_operand.hbm [shape: f32[16,32], index: 1, kind: input, shape index: {}]   ;;  %s646_s2 = inlined_call_operand.vmem [shape: f32[1,32], index: 2, kind: input, shape index: {}]   ;;  %s647_s3 = inlined_call_operand.hbm [shape: f32[32,32], index: 3, kind: input, shape index: {}]   ;;  %s648_s4 = inlined_call_operand.vmem [shape: f32[1,32], index: 4, kind: input, shape index: {}]   ;;  %s649_s5 = inlined_call_operand.hbm [shape: f32[32,128], index: 5, kind: input, shape index: {}]   ;;  %s650_s6 = inlined_call_operand.vmem [shape: f32[1,128], index: 6, kind: input, shape index: {}]   ;;  %s651_s7 = inlined_call_operand.hbm [shape: f32[16,128], index: 7, kind: output, shape index: {}]  }
   0x1   :  { %13 = vsyncpa [#allocation6], 0 }
   0x2   :  { %14 = vsyncpa [#allocation9], 0 }
   0x3   :  { %15 = vsyncpa [#allocation4], 0  ;;  %s554_s24 = smov [#allocation5]   ;;  %s555_s26 = smov [#allocation2]  }
   0x4   :  { %s33_s25 = sshll.u32 %s554_s24, 4  ;;  %s21_s27 = sshll.u32 %s555_s26, 4  ;;  %s34_s25 = int_to_ptr.vmem [resolvable:$true] %s33_s25  ;;  %s22_s27 = int_to_ptr.vmem [resolvable:$true] %s21_s27 }
   0x5   :  { %s454_s28 = scalar_lea.vmem %s34_s25, 256  ;;  %p459_p1 = scmp.lt.s32.totalorder %s34_s25, %s34_s25 }
   0x6   :  { %p455_p0 = scmp.ne.s32.totalorder %s34_s25, %s454_s28  ;;  %p460_p2 = scmp.lt.s32.totalorder %s454_s28, %s454_s28 }
   0x8   :  { %p461_p3 = por %p460_p2, %p459_p1 }
   0xa   :  { %p462_p4 = pnand %p461_p3, %p455_p0 }
   0xc   :  { %465 = shalt.err (!%p462_p4)
}
   0xd   :  { %s556_s29 = smov 128   ;;  %s557_s30 = smov 8  }
   0xe   :  { %39 = dma.hbm_to_vmem [thread:$0]  %s645_s1, 256, %s34_s25, [#allocation6], %s556_s29, %s556_s29, %s557_s30  }
   0xf   :  { %s474_s10 = scalar_lea.vmem %s22_s27, 256  ;;  %p479_p6 = scmp.lt.s32.totalorder %s22_s27, %s22_s27 }
  0x10   :  { %p475_p5 = scmp.ne.s32.totalorder %s22_s27, %s474_s10  ;;  %p480_p7 = scmp.lt.s32.totalorder %s474_s10, %s474_s10 }
  0x12   :  { %p481_p8 = por %p480_p7, %p479_p6 }
  0x14   :  { %p482_p9 = pnand %p481_p8, %p475_p5 }
  0x16   :  { %485 = shalt.err (!%p482_p9)
}
  0x17   :  { %27 = dma.hbm_to_vmem [thread:$0]  %s644_s0, 256, %s22_s27, [#allocation3], %s556_s29, %s556_s29, %s557_s30  }
  0x18   :  { %s558_s13 = smov [#allocation7]   ;;  %s559_s15 = smov [#allocation8]  }
  0x19   :  { %s47_s14 = sshll.u32 %s558_s13, 4  ;;  %s61_s16 = sshll.u32 %s559_s15, 4  ;;  %s48_s14 = int_to_ptr.vmem [resolvable:$true] %s47_s14  ;;  %s62_s16 = int_to_ptr.vmem [resolvable:$true] %s61_s16 }
  0x1a   :  { %s494_s1 = scalar_lea.vmem %s48_s14, 512  ;;  %p499_p11 = scmp.lt.s32.totalorder %s48_s14, %s48_s14 }
  0x1b   :  { %p495_p10 = scmp.ne.s32.totalorder %s48_s14, %s494_s1  ;;  %p500_p12 = scmp.lt.s32.totalorder %s494_s1, %s494_s1 }
  0x1d   :  { %p501_p13 = por %p500_p12, %p499_p11 }
  0x1f   :  { %p502_p0 = pnand %p501_p13, %p495_p10 }
  0x21   :  { %505 = shalt.err (!%p502_p0)
}
  0x22   :  { %53 = dma.hbm_to_vmem [thread:$0]  %s647_s3, 512, %s48_s14, [#allocation6], %s556_s29, %s556_s29, %s557_s30  }
  0x23   :  { %s514_s0 = scalar_lea.vmem %s62_s16, 512  ;;  %p519_p2 = scmp.lt.s32.totalorder %s62_s16, %s62_s16 }
  0x24   :  { %p515_p1 = scmp.ne.s32.totalorder %s62_s16, %s514_s0  ;;  %p520_p3 = scmp.lt.s32.totalorder %s514_s0, %s514_s0 }
  0x26   :  { %p521_p4 = por %p520_p3, %p519_p2 }
  0x28   :  { %p522_p5 = pnand %p521_p4, %p515_p1 }
  0x2a   :  { %525 = shalt.err (!%p522_p5)
}
  0x2b   :  { %67 = dma.hbm_to_vmem [thread:$0]  %s649_s5, 512, %s62_s16, [#allocation9], %s556_s29, %s556_s29, %s557_s30  }
  0x2c   :  { %546 = dma.done.wait [#allocation3], 256  }
  0x2d   :  { %547 = vsyncadd [#allocation3], 4294967040 }
  0x2e   :  { %548 = dma.done.wait [#allocation6], 768  }
  0x2f   :  { %549 = vsyncadd [#allocation6], 4294966528 }
  0x30   :  { %550 = dma.done.wait [#allocation9], 512  }
  0x31   :  { %551 = vsyncadd [#allocation9], 4294966784  ;;  %vm93_vm0 = vcmask 130048   ;;  %v85_v0 = vld [vmem:[#allocation5 + $0x8] sm:$0xff]  ;;  %v84_v1 = vld [vmem:[#allocation5] sm:$0xff]  ;;  %vm188_vm1 = vcmask 261120  }
  0x32   :  { %v82_v2 = vld [vmem:[#allocation2] sm:$0xff]  ;;  %410 = vmatprep.subr.mxu0 %v85_v0  ;;  %v83_v3 = vld [vmem:[#allocation2 + $0x8] sm:$0xff]  ;;  %v180_v4 = vld [vmem:[#allocation7 + $0x18] sm:$0xff]  ;;  %s560_s24 = smov [#allocation10]  }
  0x33   :  { %414 = vmatprep.mubr.msk.f32.mxu0 %vm93_vm0, %v82_v2  ;;  %411 = vmatpush3.msra.mxu0 %v85_v0  ;;  %v179_v5 = vld [vmem:[#allocation7 + $0x10] sm:$0xff]  ;;  %v178_v6 = vld [vmem:[#allocation7 + $0x8] sm:$0xff]  ;;  %v177_v7 = vld [vmem:[#allocation7] sm:$0xff]  ;;  %s371_s25 = sshll.u32 %s560_s24, 4  ;;  %s372_s25 = int_to_ptr.vmem [resolvable:$true] %s371_s25 }
  0x34   :  { %412 = vmatprep.subr.mxu0 %v84_v1  ;;  %417 = vmatprep.subr.mxu1 %v180_v4  ;;  %v385_v8 = vld [vmem:[%s646_s2] ss:$0 sm:$0xff]  ;;  %v275_v15 = vld [vmem:[#allocation8 + $0x18] sm:$0xff]  ;;  %v274_v16 = vld [vmem:[#allocation8 + $0x10] sm:$0xff]  ;;  %p531_p7 = scmp.lt.s32.totalorder %s372_s25, %s372_s25 }
  0x35   :  { %413 = vmatpush3.msra.mxu0 %v84_v1  ;;  %418 = vmatpush3.msra.mxu1 %v180_v4  ;;  %v273_v17 = vld [vmem:[#allocation8 + $0x8] sm:$0xff]  ;;  %v272_v18 = vld [vmem:[#allocation8] sm:$0xff] }
  0x36   :  { %415 = vmatmul.mubr.msk.f32.vlgmr.msra.gmra.mxu0 %vm93_vm0, %v83_v3  ;;  %419 = vmatprep.subr.mxu1 %v179_v5  ;;  %v388_v19 = vld [vmem:[%s648_s4] ss:$0 sm:$0xff]  ;;  %s526_s4 = scalar_lea.vmem %s372_s25, 256 }
  0x37   :  { %420 = vmatpush3.msra.mxu1 %v179_v5  ;;  %428 = vmatprep.subr.mxu0 %v275_v15  ;;  %v391_v26 = vld [vmem:[%s650_s6] ss:$0 sm:$0xff]  ;;  %p527_p6 = scmp.ne.s32.totalorder %s372_s25, %s526_s4  ;;  %p532_p8 = scmp.lt.s32.totalorder %s526_s4, %s526_s4 }
  0x38   :  { %421 = vmatprep.subr.mxu1 %v178_v6  ;;  %429 = vmatpush3.msra.mxu0 %v275_v15 }
  0x39   :  { %422 = vmatpush3.msra.mxu1 %v178_v6  ;;  %430 = vmatprep.subr.mxu0 %v274_v16  ;;  %p533_p9 = por %p532_p8, %p531_p7 }
  0x3a   :  { %423 = vmatprep.subr.mxu1 %v177_v7  ;;  %431 = vmatpush3.msra.mxu0 %v274_v16 }
  0x3b   :  { %424 = vmatpush3.msra.mxu1 %v177_v7  ;;  %432 = vmatprep.subr.mxu0 %v273_v17  ;;  %p534_p10 = pnand %p533_p9, %p527_p6 }
  0x3c   :  { %433 = vmatpush3.msra.mxu0 %v273_v17 }
  0x3d   :  { %434 = vmatprep.subr.mxu0 %v272_v18 }
  0x3e   :  { %435 = vmatpush3.msra.mxu0 %v272_v18 }
  0xf6   :  { %v416_v9 = vpop.f32.mrf.mxu0 }
  0xf7   :  { %v172_v10 = vadd.f32 %v416_v9, %v385_v8 }
  0xf8   :  { %v166_v11 = vpop.f32.mrf.mxu0 }
  0xf9   :  { %v167_v12 = vadd.f32 %v385_v8, %v166_v11  ;;  %v176_v14 = vmax.f32 %v172_v10, 0.0 }
  0xfb   :  { %v175_v13 = vmax.f32 %v167_v12, 0.0 }
  0xfd   :  { %425 = vmatprep.mubr.msk.f32.mxu1 %vm188_vm1, %v175_v13 }
  0xfe   :  { %426 = vmatmul.mubr.msk.f32.vlgmr.msra.gmra.mxu1 %vm188_vm1, %v176_v14 }
 0x1be   :  { %v427_v20 = vpop.f32.mrf.mxu1 }
 0x1bf   :  { %v267_v21 = vadd.f32 %v427_v20, %v388_v19 }
 0x1c0   :  { %v261_v22 = vpop.f32.mrf.mxu1 }
 0x1c1   :  { %v262_v23 = vadd.f32 %v388_v19, %v261_v22  ;;  %v271_v25 = vmax.f32 %v267_v21, 0.0 }
 0x1c3   :  { %v270_v24 = vmax.f32 %v262_v23, 0.0 }
 0x1c5   :  { %436 = vmatprep.mubr.msk.f32.mxu0 %vm188_vm1, %v270_v24 }
 0x1c6   :  { %437 = vmatmul.mubr.msk.f32.vlgmr.msra.gmra.mxu0 %vm188_vm1, %v271_v25 }
 0x286   :  { %v438_v27 = vpop.f32.mrf.mxu0 }
 0x287   :  { %v361_v28 = vadd.f32 %v438_v27, %v391_v26 }
 0x288   :  { %v355_v29 = vpop.f32.mrf.mxu0 }
 0x289   :  { %365 = vst [vmem:[#allocation10 + $0x8] sm:$0xff] %v361_v28  ;;  %v356_v30 = vadd.f32 %v391_v26, %v355_v29 }
 0x28b   :  { %364 = vst [vmem:[#allocation10] sm:$0xff] %v356_v30 }
 0x28c   :  { %537 = shalt.err (!%p534_p10)
}
 0x28d   :  { %377 = dma.vmem_to_hbm [thread:$0]  %s372_s25, 256, %s651_s7, [#allocation4], %s556_s29, %s556_s29, %s557_s30  }
 0x28e   :  { %552 = dma.done.wait [#allocation4], 256  }
 0x28f   :  { %553 = vsyncadd [#allocation4], 4294967040 }
 0x290   :  { %381 = vsyncpa [#allocation3], 1 }
 0x291   :  { %382 = vsyncpa [#allocation6], 1 }
 0x292   :  { %383 = vsyncpa [#allocation9], 1 }
 0x293   :  { %384 = vsyncpa [#allocation4], 1 }

// kernel: tpu_custom_call.1
= control target key start
LH: loop header
LB: loop body
LE: loop exit
PB: predicated region body
PF: predicated region fallthrough
CT: control target
= control target key end

     0   :  { %12 = vsyncpa [#allocation3], 0  ;;  %s644_s0 = inlined_call_operand.hbm [shape: f32[16,16], index: 0, kind: input, shape index: {}]   ;;  %s645_s1 = inlined_call_operand.hbm [shape: f32[16,32], index: 1, kind: input, shape index: {}]   ;;  %s646_s2 = inlined_call_operand.vmem [shape: f32[1,32], index: 2, kind: input, shape index: {}]   ;;  %s647_s3 = inlined_call_operand.hbm [shape: f32[32,32], index: 3, kind: input, shape index: {}]   ;;  %s648_s4 = inlined_call_operand.vmem [shape: f32[1,32], index: 4, kind: input, shape index: {}]   ;;  %s649_s5 = inlined_call_operand.hbm [shape: f32[32,128], index: 5, kind: input, shape index: {}]   ;;  %s650_s6 = inlined_call_operand.vmem [shape: f32[1,128], index: 6, kind: input, shape index: {}]   ;;  %s651_s7 = inlined_call_operand.hbm [shape: f32[16,128], index: 7, kind: output, shape index: {}]  }
   0x1   :  { %13 = vsyncpa [#allocation6], 0 }
   0x2   :  { %14 = vsyncpa [#allocation9], 0 }
   0x3   :  { %15 = vsyncpa [#allocation4], 0  ;;  %s554_s24 = smov [#allocation5]   ;;  %s555_s26 = smov [#allocation2]  }
   0x4   :  { %s33_s25 = sshll.u32 %s554_s24, 4  ;;  %s21_s27 = sshll.u32 %s555_s26, 4  ;;  %s34_s25 = int_to_ptr.vmem [resolvable:$true] %s33_s25  ;;  %s22_s27 = int_to_ptr.vmem [resolvable:$true] %s21_s27 }
   0x5   :  { %s454_s28 = scalar_lea.vmem %s34_s25, 256  ;;  %p459_p1 = scmp.lt.s32.totalorder %s34_s25, %s34_s25 }
   0x6   :  { %p455_p0 = scmp.ne.s32.totalorder %s34_s25, %s454_s28  ;;  %p460_p2 = scmp.lt.s32.totalorder %s454_s28, %s454_s28 }
   0x8   :  { %p461_p3 = por %p460_p2, %p459_p1 }
   0xa   :  { %p462_p4 = pnand %p461_p3, %p455_p0 }
   0xc   :  { %465 = shalt.err (!%p462_p4)
}
   0xd   :  { %s556_s29 = smov 128   ;;  %s557_s30 = smov 8  }
   0xe   :  { %39 = dma.hbm_to_vmem [thread:$0]  %s645_s1, 256, %s34_s25, [#allocation6], %s556_s29, %s556_s29, %s557_s30  }
   0xf   :  { %s474_s10 = scalar_lea.vmem %s22_s27, 256  ;;  %p479_p6 = scmp.lt.s32.totalorder %s22_s27, %s22_s27 }
  0x10   :  { %p475_p5 = scmp.ne.s32.totalorder %s22_s27, %s474_s10  ;;  %p480_p7 = scmp.lt.s32.totalorder %s474_s10, %s474_s10 }
  0x12   :  { %p481_p8 = por %p480_p7, %p479_p6 }
  0x14   :  { %p482_p9 = pnand %p481_p8, %p475_p5 }
  0x16   :  { %485 = shalt.err (!%p482_p9)
}
  0x17   :  { %27 = dma.hbm_to_vmem [thread:$0]  %s644_s0, 256, %s22_s27, [#allocation3], %s556_s29, %s556_s29, %s557_s30  }
  0x18   :  { %s558_s13 = smov [#allocation7]   ;;  %s559_s15 = smov [#allocation8]  }
  0x19   :  { %s47_s14 = sshll.u32 %s558_s13, 4  ;;  %s61_s16 = sshll.u32 %s559_s15, 4  ;;  %s48_s14 = int_to_ptr.vmem [resolvable:$true] %s47_s14  ;;  %s62_s16 = int_to_ptr.vmem [resolvable:$true] %s61_s16 }
  0x1a   :  { %s494_s1 = scalar_lea.vmem %s48_s14, 512  ;;  %p499_p11 = scmp.lt.s32.totalorder %s48_s14, %s48_s14 }
  0x1b   :  { %p495_p10 = scmp.ne.s32.totalorder %s48_s14, %s494_s1  ;;  %p500_p12 = scmp.lt.s32.totalorder %s494_s1, %s494_s1 }
  0x1d   :  { %p501_p13 = por %p500_p12, %p499_p11 }
  0x1f   :  { %p502_p0 = pnand %p501_p13, %p495_p10 }
  0x21   :  { %505 = shalt.err (!%p502_p0)
}
  0x22   :  { %53 = dma.hbm_to_vmem [thread:$0]  %s647_s3, 512, %s48_s14, [#allocation6], %s556_s29, %s556_s29, %s557_s30  }
  0x23   :  { %s514_s0 = scalar_lea.vmem %s62_s16, 512  ;;  %p519_p2 = scmp.lt.s32.totalorder %s62_s16, %s62_s16 }
  0x24   :  { %p515_p1 = scmp.ne.s32.totalorder %s62_s16, %s514_s0  ;;  %p520_p3 = scmp.lt.s32.totalorder %s514_s0, %s514_s0 }
  0x26   :  { %p521_p4 = por %p520_p3, %p519_p2 }
  0x28   :  { %p522_p5 = pnand %p521_p4, %p515_p1 }
  0x2a   :  { %525 = shalt.err (!%p522_p5)
}
  0x2b   :  { %67 = dma.hbm_to_vmem [thread:$0]  %s649_s5, 512, %s62_s16, [#allocation9], %s556_s29, %s556_s29, %s557_s30  }
  0x2c   :  { %546 = dma.done.wait [#allocation3], 256  }
  0x2d   :  { %547 = vsyncadd [#allocation3], 4294967040 }
  0x2e   :  { %548 = dma.done.wait [#allocation6], 768  }
  0x2f   :  { %549 = vsyncadd [#allocation6], 4294966528 }
  0x30   :  { %550 = dma.done.wait [#allocation9], 512  }
  0x31   :  { %551 = vsyncadd [#allocation9], 4294966784  ;;  %vm93_vm0 = vcmask 130048   ;;  %v85_v0 = vld [vmem:[#allocation5 + $0x8] sm:$0xff]  ;;  %v84_v1 = vld [vmem:[#allocation5] sm:$0xff]  ;;  %vm188_vm1 = vcmask 261120  }
  0x32   :  { %v82_v2 = vld [vmem:[#allocation2] sm:$0xff]  ;;  %410 = vmatprep.subr.mxu0 %v85_v0  ;;  %v83_v3 = vld [vmem:[#allocation2 + $0x8] sm:$0xff]  ;;  %v180_v4 = vld [vmem:[#allocation7 + $0x18] sm:$0xff]  ;;  %s560_s24 = smov [#allocation10]  }
  0x33   :  { %414 = vmatprep.mubr.msk.f32.mxu0 %vm93_vm0, %v82_v2  ;;  %411 = vmatpush3.msra.mxu0 %v85_v0  ;;  %v179_v5 = vld [vmem:[#allocation7 + $0x10] sm:$0xff]  ;;  %v178_v6 = vld [vmem:[#allocation7 + $0x8] sm:$0xff]  ;;  %v177_v7 = vld [vmem:[#allocation7] sm:$0xff]  ;;  %s371_s25 = sshll.u32 %s560_s24, 4  ;;  %s372_s25 = int_to_ptr.vmem [resolvable:$true] %s371_s25 }
  0x34   :  { %412 = vmatprep.subr.mxu0 %v84_v1  ;;  %417 = vmatprep.subr.mxu1 %v180_v4  ;;  %v385_v8 = vld [vmem:[%s646_s2] ss:$0 sm:$0xff]  ;;  %v275_v15 = vld [vmem:[#allocation8 + $0x18] sm:$0xff]  ;;  %v274_v16 = vld [vmem:[#allocation8 + $0x10] sm:$0xff]  ;;  %p531_p7 = scmp.lt.s32.totalorder %s372_s25, %s372_s25 }
  0x35   :  { %413 = vmatpush3.msra.mxu0 %v84_v1  ;;  %418 = vmatpush3.msra.mxu1 %v180_v4  ;;  %v273_v17 = vld [vmem:[#allocation8 + $0x8] sm:$0xff]  ;;  %v272_v18 = vld [vmem:[#allocation8] sm:$0xff] }
  0x36   :  { %415 = vmatmul.mubr.msk.f32.vlgmr.msra.gmra.mxu0 %vm93_vm0, %v83_v3  ;;  %419 = vmatprep.subr.mxu1 %v179_v5  ;;  %v388_v19 = vld [vmem:[%s648_s4] ss:$0 sm:$0xff]  ;;  %s526_s4 = scalar_lea.vmem %s372_s25, 256 }
  0x37   :  { %420 = vmatpush3.msra.mxu1 %v179_v5  ;;  %428 = vmatprep.subr.mxu0 %v275_v15  ;;  %v391_v26 = vld [vmem:[%s650_s6] ss:$0 sm:$0xff]  ;;  %p527_p6 = scmp.ne.s32.totalorder %s372_s25, %s526_s4  ;;  %p532_p8 = scmp.lt.s32.totalorder %s526_s4, %s526_s4 }
  0x38   :  { %421 = vmatprep.subr.mxu1 %v178_v6  ;;  %429 = vmatpush3.msra.mxu0 %v275_v15 }
  0x39   :  { %422 = vmatpush3.msra.mxu1 %v178_v6  ;;  %430 = vmatprep.subr.mxu0 %v274_v16  ;;  %p533_p9 = por %p532_p8, %p531_p7 }
  0x3a   :  { %423 = vmatprep.subr.mxu1 %v177_v7  ;;  %431 = vmatpush3.msra.mxu0 %v274_v16 }
  0x3b   :  { %424 = vmatpush3.msra.mxu1 %v177_v7  ;;  %432 = vmatprep.subr.mxu0 %v273_v17  ;;  %p534_p10 = pnand %p533_p9, %p527_p6 }
  0x3c   :  { %433 = vmatpush3.msra.mxu0 %v273_v17 }
  0x3d   :  { %434 = vmatprep.subr.mxu0 %v272_v18 }
  0x3e   :  { %435 = vmatpush3.msra.mxu0 %v272_v18 }
  0xf6   :  { %v416_v9 = vpop.f32.mrf.mxu0 }
  0xf7   :  { %v172_v10 = vadd.f32 %v416_v9, %v385_v8 }
  0xf8   :  { %v166_v11 = vpop.f32.mrf.mxu0 }
  0xf9   :  { %v167_v12 = vadd.f32 %v385_v8, %v166_v11  ;;  %v176_v14 = vmax.f32 %v172_v10, 0.0 }
  0xfb   :  { %v175_v13 = vmax.f32 %v167_v12, 0.0 }
  0xfd   :  { %425 = vmatprep.mubr.msk.f32.mxu1 %vm188_vm1, %v175_v13 }
  0xfe   :  { %426 = vmatmul.mubr.msk.f32.vlgmr.msra.gmra.mxu1 %vm188_vm1, %v176_v14 }
 0x1be   :  { %v427_v20 = vpop.f32.mrf.mxu1 }
 0x1bf   :  { %v267_v21 = vadd.f32 %v427_v20, %v388_v19 }
 0x1c0   :  { %v261_v22 = vpop.f32.mrf.mxu1 }
 0x1c1   :  { %v262_v23 = vadd.f32 %v388_v19, %v261_v22  ;;  %v271_v25 = vmax.f32 %v267_v21, 0.0 }
 0x1c3   :  { %v270_v24 = vmax.f32 %v262_v23, 0.0 }
 0x1c5   :  { %436 = vmatprep.mubr.msk.f32.mxu0 %vm188_vm1, %v270_v24 }
 0x1c6   :  { %437 = vmatmul.mubr.msk.f32.vlgmr.msra.gmra.mxu0 %vm188_vm1, %v271_v25 }
 0x286   :  { %v438_v27 = vpop.f32.mrf.mxu0 }
 0x287   :  { %v361_v28 = vadd.f32 %v438_v27, %v391_v26 }
 0x288   :  { %v355_v29 = vpop.f32.mrf.mxu0 }
 0x289   :  { %365 = vst [vmem:[#allocation10 + $0x8] sm:$0xff] %v361_v28  ;;  %v356_v30 = vadd.f32 %v391_v26, %v355_v29 }
 0x28b   :  { %364 = vst [vmem:[#allocation10] sm:$0xff] %v356_v30 }
 0x28c   :  { %537 = shalt.err (!%p534_p10)
}
 0x28d   :  { %377 = dma.vmem_to_hbm [thread:$0]  %s372_s25, 256, %s651_s7, [#allocation4], %s556_s29, %s556_s29, %s557_s30  }
 0x28e   :  { %552 = dma.done.wait [#allocation4], 256  }
 0x28f   :  { %553 = vsyncadd [#allocation4], 4294967040 }
 0x290   :  { %381 = vsyncpa [#allocation3], 1 }
 0x291   :  { %382 = vsyncpa [#allocation6], 1 }
 0x292   :  { %383 = vsyncpa [#allocation9], 1 }
 0x293   :  { %384 = vsyncpa [#allocation4], 1 }

</bundles_post_ra>
